<compile_context>
chip_gen: v7x
topology: tpu7x:2x2x1
jax: 0.10.0
libtpu: 0.0.40
codegen_flags: <defaults>
</compile_context>

<pallas_src>
import functools

import jax
import jax.numpy as jnp
from jax.experimental import pallas as pl
from jax.experimental.pallas import tpu as pltpu

NUM_BLOCKS = 2
CLAMP = 2.0


def _inn_kernel(x_ref, wf_ref, bf_ref, wh_ref, bh_ref, wg_ref, bg_ref, o_ref,
                *, rev, num_blocks, c1, c2):
    # x_ref block: (B, C, TS, 128).  Channel is a major (tile-plane) axis, so each
    # per-channel slab is a dense (B, 1, TS, 128) tile -- no relayout, no masking.
    def chan(k):
        return x_ref[:, k:k + 1, :, :].astype(jnp.float32)

    x1 = [chan(k) for k in range(c1)]
    x2 = [chan(c1 + k) for k in range(c2)]

    def lin(h, w_ref, b_ref, i, n_in, n_out):
        # 1x1 conv as unrolled VPU FMAs with scalar weights read from SMEM.
        # (MXU deliberately skipped: contraction dim == n_in <= 2.)
        outs = []
        for j in range(n_out):
            acc = h[0] * w_ref[i, j] + b_ref[i, j]
            for k in range(1, n_in):
                acc = acc + h[k] * w_ref[i, k * n_out + j]
            outs.append(acc)
        return outs

    if not rev:
        for i in range(num_blocks):
            f = lin(x2, wf_ref, bf_ref, i, c2, c1)
            x1 = [a + b for a, b in zip(x1, f)]
            h = lin(x1, wh_ref, bh_ref, i, c1, c2)
            g = lin(x1, wg_ref, bg_ref, i, c1, c2)
            e = [jnp.exp(CLAMP * jnp.tanh(v)) for v in h]   # 1 tanh + 1 exp per chan
            x2 = [a * ev + gv for a, ev, gv in zip(x2, e, g)]
    else:
        for i in reversed(range(num_blocks)):
            h = lin(x1, wh_ref, bh_ref, i, c1, c2)
            g = lin(x1, wg_ref, bg_ref, i, c1, c2)
            # exact exp(-s) keeps the inverse consistent with the forward pass;
            # pl.reciprocal(exp(s), approx=True) would cut EUP work if compute-bound.
            e = [jnp.exp(-CLAMP * jnp.tanh(v)) for v in h]
            x2 = [(a - gv) * ev for a, gv, ev in zip(x2, g, e)]
            f = lin(x2, wf_ref, bf_ref, i, c2, c1)
            x1 = [a - b for a, b in zip(x1, f)]

    ys = x1 + x2
    for k in range(c1 + c2):
        # per-channel tile-plane stores: lane- and sublane-dense, unmasked.
        o_ref[:, k:k + 1, :, :] = ys[k].astype(o_ref.dtype)


def _make_params(latent_channels, num_blocks, key):
    c1 = latent_channels // 2
    c2 = latent_channels - c1
    ks = jax.random.split(key, 6)
    scale = 0.2
    # Weights stored flattened row-major over (in_ch, out_ch) for scalar SMEM reads.
    wf = scale * jax.random.normal(ks[0], (num_blocks, c2, c1), jnp.float32)
    wh = scale * jax.random.normal(ks[1], (num_blocks, c1, c2), jnp.float32)
    wg = scale * jax.random.normal(ks[2], (num_blocks, c1, c2), jnp.float32)
    bf = scale * jax.random.normal(ks[3], (num_blocks, c1), jnp.float32)
    bh = scale * jax.random.normal(ks[4], (num_blocks, c2), jnp.float32)
    bg = scale * jax.random.normal(ks[5], (num_blocks, c2), jnp.float32)
    return (wf.reshape(num_blocks, c2 * c1), bf,
            wh.reshape(num_blocks, c1 * c2), bh,
            wg.reshape(num_blocks, c1 * c2), bg)


def fed_forward(x_nchw, params, *, rev=False, block_bytes=1 << 20):
    """FED.forward(x, rev): x is NCHW, output is NCHW, same shape/dtype."""
    wf, bf, wh, bh, wg, bg = params
    B, C, H, W = x_nchw.shape
    c1 = C // 2
    c2 = C - c1
    num_blocks = wf.shape[0]
    HW = H * W

    # Pixel-dense layout via a free reshape: (B, C, S, L) with L = 128 lanes.
    L = 128 if HW % 128 == 0 else HW     # fallback keeps full extent on the lane axis
    S = HW // L
    x4 = x_nchw.reshape(B, C, S, L)

    # Sublane-tile: largest multiple of 8 rows keeping one f32 block near block_bytes.
    bytes_per_row = B * C * L * 4
    ts = max(8, (block_bytes // bytes_per_row) // 8 * 8)
    ts = min(ts, S)                       # ts == S (full extent) is always legal
    grid = (pl.cdiv(S, ts),)

    kernel = functools.partial(_inn_kernel, rev=rev, num_blocks=num_blocks,
                               c1=c1, c2=c2)

    block_spec = pl.BlockSpec((B, C, ts, L), lambda i: (0, 0, i, 0))
    smem_spec = pl.BlockSpec(memory_space=pltpu.MemorySpace.SMEM)

    flops_per_px = num_blocks * (6 * c1 * c2 + 2 * c1 + 5 * c2)
    cost = pl.CostEstimate(
        flops=int(B * HW * flops_per_px),
        transcendentals=int(B * HW * num_blocks * 2 * c2),
        bytes_accessed=int(2 * x_nchw.size * x_nchw.dtype.itemsize),
    )

    out4 = pl.pallas_call(
        kernel,
        out_shape=jax.ShapeDtypeStruct((B, C, S, L), x_nchw.dtype),
        grid_spec=pltpu.PrefetchScalarGridSpec(
            num_scalar_prefetch=0,
            grid=grid,
            in_specs=[block_spec,
                      smem_spec, smem_spec, smem_spec,
                      smem_spec, smem_spec, smem_spec],
            out_specs=pl.BlockSpec((B, C, ts, L), lambda i: (0, 0, i, 0)),
        ),
        compiler_params=pltpu.CompilerParams(dimension_semantics=("parallel",)),
        cost_estimate=cost,
    )(x4, wf, bf, wh, bh, wg, bg)

    return out4.reshape(B, C, H, W)


def _ref_forward(x_nchw, params, *, rev=False):
    """Pure-JAX reference of the same coupling network (for validation)."""
    wf, bf, wh, bh, wg, bg = params
    B, C, H, W = x_nchw.shape
    c1 = C // 2
    c2 = C - c1
    nb = wf.shape[0]
    Wf = wf.reshape(nb, c2, c1)
    Wh = wh.reshape(nb, c1, c2)
    Wg = wg.reshape(nb, c1, c2)
    x = x_nchw.astype(jnp.float32)
    x1, x2 = x[:, :c1], x[:, c1:]

    def lin(h, Wm, b):
        y = jnp.einsum('bihw,io->bohw', h, Wm,
                       precision=jax.lax.Precision.HIGHEST)
        return y + b[None, :, None, None]

    if not rev:
        for i in range(nb):
            x1 = x1 + lin(x2, Wf[i], bf[i])
            s = CLAMP * jnp.tanh(lin(x1, Wh[i], bh[i]))
            x2 = x2 * jnp.exp(s) + lin(x1, Wg[i], bg[i])
    else:
        for i in reversed(range(nb)):
            s = CLAMP * jnp.tanh(lin(x1, Wh[i], bh[i]))
            x2 = (x2 - lin(x1, Wg[i], bg[i])) * jnp.exp(-s)
            x1 = x1 - lin(x2, Wf[i], bf[i])
    return jnp.concatenate([x1, x2], axis=1).astype(x_nchw.dtype)


if __name__ == "__main__":
    key = jax.random.PRNGKey(0)
    k_x, k_p = jax.random.split(key)

    B, C, H, W = 2, 4, 16, 16            # latent_channels = 4
    x = jax.random.normal(k_x, (B, C, H, W), jnp.float32)
    params = _make_params(C, NUM_BLOCKS, k_p)

    y = fed_forward(x, params, rev=False)        # FED(x)
    x_rec = fed_forward(y, params, rev=True)     # FED(y, rev=True)
    jax.block_until_ready((y, x_rec))

    y_ref = _ref_forward(x, params, rev=False)
    err_fwd = float(jnp.max(jnp.abs(y - y_ref)))
    err_inv = float(jnp.max(jnp.abs(x_rec - x)))
    assert y.shape == x.shape and x_rec.shape == x.shape
    assert err_fwd < 1e-3, f"forward mismatch vs pure-JAX reference: {err_fwd}"
    assert err_inv < 1e-3, f"inversion error too large: {err_inv}"

    # Also exercise a multi-step, pipelined grid (4 sublane-tiles).
    xb = jax.random.normal(k_x, (2, 4, 64, 64), jnp.float32)
    yb = fed_forward(xb, params, rev=False, block_bytes=8 * 4096)
    xb_rec = fed_forward(yb, params, rev=True, block_bytes=8 * 4096)
    jax.block_until_ready((yb, xb_rec))
    err_b = float(jnp.max(jnp.abs(xb_rec - xb)))
    assert err_b < 1e-3, f"inversion error (tiled) too large: {err_b}"

    print("KERNEL_OK")
</pallas_src>

<mosaic_0001>
module attributes {stable_mosaic.version = 11 : i64} {
  func.func @_inn_kernel(%arg0: i32, %arg1: memref<2x4x2x128xf32, #tpu.memory_space<vmem>>, %arg2: memref<2x4xf32, #tpu.memory_space<smem>>, %arg3: memref<2x2xf32, #tpu.memory_space<smem>>, %arg4: memref<2x4xf32, #tpu.memory_space<smem>>, %arg5: memref<2x2xf32, #tpu.memory_space<smem>>, %arg6: memref<2x4xf32, #tpu.memory_space<smem>>, %arg7: memref<2x2xf32, #tpu.memory_space<smem>>, %arg8: memref<2x4x2x128xf32, #tpu.memory_space<vmem>>) attributes {dimension_semantics = [#tpu.dimension_semantics<parallel>], iteration_bounds = array<i64: 1>, scalar_prefetch = 0 : i64, scratch_operands = 0 : i64, tpu.core_type = #tpu.core_type<tc>, window_params = [{transform_indices = @transform_0, window_bounds = array<i64: 2, 4, 2, 128>}, {transform_indices = @transform_1, window_bounds = array<i64: 2, 4>}, {transform_indices = @transform_2, window_bounds = array<i64: 2, 2>}, {transform_indices = @transform_3, window_bounds = array<i64: 2, 4>}, {transform_indices = @transform_4, window_bounds = array<i64: 2, 2>}, {transform_indices = @transform_5, window_bounds = array<i64: 2, 4>}, {transform_indices = @transform_6, window_bounds = array<i64: 2, 2>}, {transform_indices = @transform_7, window_bounds = array<i64: 2, 4, 2, 128>}]} {
    %c0 = arith.constant 0 : index
    %c0_0 = arith.constant 0 : index
    %c0_1 = arith.constant 0 : index
    %c0_2 = arith.constant 0 : index
    %0 = vector.load %arg1[%c0, %c0_0, %c0_1, %c0_2] : memref<2x4x2x128xf32, #tpu.memory_space<vmem>>, vector<2x1x2x128xf32>
    %c0_3 = arith.constant 0 : index
    %c1 = arith.constant 1 : index
    %c0_4 = arith.constant 0 : index
    %c0_5 = arith.constant 0 : index
    %1 = vector.load %arg1[%c0_3, %c1, %c0_4, %c0_5] : memref<2x4x2x128xf32, #tpu.memory_space<vmem>>, vector<2x1x2x128xf32>
    %c0_6 = arith.constant 0 : index
    %c2 = arith.constant 2 : index
    %c0_7 = arith.constant 0 : index
    %c0_8 = arith.constant 0 : index
    %2 = vector.load %arg1[%c0_6, %c2, %c0_7, %c0_8] : memref<2x4x2x128xf32, #tpu.memory_space<vmem>>, vector<2x1x2x128xf32>
    %c0_9 = arith.constant 0 : index
    %c3 = arith.constant 3 : index
    %c0_10 = arith.constant 0 : index
    %c0_11 = arith.constant 0 : index
    %3 = vector.load %arg1[%c0_9, %c3, %c0_10, %c0_11] : memref<2x4x2x128xf32, #tpu.memory_space<vmem>>, vector<2x1x2x128xf32>
    %c0_12 = arith.constant 0 : index
    %c0_13 = arith.constant 0 : index
    %4 = memref.load %arg2[%c0_12, %c0_13] : memref<2x4xf32, #tpu.memory_space<smem>>
    %5 = vector.broadcast %4 : f32 to vector<2x1x2x128xf32>
    %6 = arith.mulf %2, %5 : vector<2x1x2x128xf32>
    %c0_14 = arith.constant 0 : index
    %c0_15 = arith.constant 0 : index
    %7 = memref.load %arg3[%c0_14, %c0_15] : memref<2x2xf32, #tpu.memory_space<smem>>
    %8 = vector.broadcast %7 : f32 to vector<2x1x2x128xf32>
    %9 = arith.addf %6, %8 : vector<2x1x2x128xf32>
    %c0_16 = arith.constant 0 : index
    %c2_17 = arith.constant 2 : index
    %10 = memref.load %arg2[%c0_16, %c2_17] : memref<2x4xf32, #tpu.memory_space<smem>>
    %11 = vector.broadcast %10 : f32 to vector<2x1x2x128xf32>
    %12 = arith.mulf %3, %11 : vector<2x1x2x128xf32>
    %13 = arith.addf %9, %12 : vector<2x1x2x128xf32>
    %c0_18 = arith.constant 0 : index
    %c1_19 = arith.constant 1 : index
    %14 = memref.load %arg2[%c0_18, %c1_19] : memref<2x4xf32, #tpu.memory_space<smem>>
    %15 = vector.broadcast %14 : f32 to vector<2x1x2x128xf32>
    %16 = arith.mulf %2, %15 : vector<2x1x2x128xf32>
    %c0_20 = arith.constant 0 : index
    %c1_21 = arith.constant 1 : index
    %17 = memref.load %arg3[%c0_20, %c1_21] : memref<2x2xf32, #tpu.memory_space<smem>>
    %18 = vector.broadcast %17 : f32 to vector<2x1x2x128xf32>
    %19 = arith.addf %16, %18 : vector<2x1x2x128xf32>
    %c0_22 = arith.constant 0 : index
    %c3_23 = arith.constant 3 : index
    %20 = memref.load %arg2[%c0_22, %c3_23] : memref<2x4xf32, #tpu.memory_space<smem>>
    %21 = vector.broadcast %20 : f32 to vector<2x1x2x128xf32>
    %22 = arith.mulf %3, %21 : vector<2x1x2x128xf32>
    %23 = arith.addf %19, %22 : vector<2x1x2x128xf32>
    %24 = arith.addf %0, %13 : vector<2x1x2x128xf32>
    %25 = arith.addf %1, %23 : vector<2x1x2x128xf32>
    %c0_24 = arith.constant 0 : index
    %c0_25 = arith.constant 0 : index
    %26 = memref.load %arg4[%c0_24, %c0_25] : memref<2x4xf32, #tpu.memory_space<smem>>
    %27 = vector.broadcast %26 : f32 to vector<2x1x2x128xf32>
    %28 = arith.mulf %24, %27 : vector<2x1x2x128xf32>
    %c0_26 = arith.constant 0 : index
    %c0_27 = arith.constant 0 : index
    %29 = memref.load %arg5[%c0_26, %c0_27] : memref<2x2xf32, #tpu.memory_space<smem>>
    %30 = vector.broadcast %29 : f32 to vector<2x1x2x128xf32>
    %31 = arith.addf %28, %30 : vector<2x1x2x128xf32>
    %c0_28 = arith.constant 0 : index
    %c2_29 = arith.constant 2 : index
    %32 = memref.load %arg4[%c0_28, %c2_29] : memref<2x4xf32, #tpu.memory_space<smem>>
    %33 = vector.broadcast %32 : f32 to vector<2x1x2x128xf32>
    %34 = arith.mulf %25, %33 : vector<2x1x2x128xf32>
    %35 = arith.addf %31, %34 : vector<2x1x2x128xf32>
    %c0_30 = arith.constant 0 : index
    %c1_31 = arith.constant 1 : index
    %36 = memref.load %arg4[%c0_30, %c1_31] : memref<2x4xf32, #tpu.memory_space<smem>>
    %37 = vector.broadcast %36 : f32 to vector<2x1x2x128xf32>
    %38 = arith.mulf %24, %37 : vector<2x1x2x128xf32>
    %c0_32 = arith.constant 0 : index
    %c1_33 = arith.constant 1 : index
    %39 = memref.load %arg5[%c0_32, %c1_33] : memref<2x2xf32, #tpu.memory_space<smem>>
    %40 = vector.broadcast %39 : f32 to vector<2x1x2x128xf32>
    %41 = arith.addf %38, %40 : vector<2x1x2x128xf32>
    %c0_34 = arith.constant 0 : index
    %c3_35 = arith.constant 3 : index
    %42 = memref.load %arg4[%c0_34, %c3_35] : memref<2x4xf32, #tpu.memory_space<smem>>
    %43 = vector.broadcast %42 : f32 to vector<2x1x2x128xf32>
    %44 = arith.mulf %25, %43 : vector<2x1x2x128xf32>
    %45 = arith.addf %41, %44 : vector<2x1x2x128xf32>
    %c0_36 = arith.constant 0 : index
    %c0_37 = arith.constant 0 : index
    %46 = memref.load %arg6[%c0_36, %c0_37] : memref<2x4xf32, #tpu.memory_space<smem>>
    %47 = vector.broadcast %46 : f32 to vector<2x1x2x128xf32>
    %48 = arith.mulf %24, %47 : vector<2x1x2x128xf32>
    %c0_38 = arith.constant 0 : index
    %c0_39 = arith.constant 0 : index
    %49 = memref.load %arg7[%c0_38, %c0_39] : memref<2x2xf32, #tpu.memory_space<smem>>
    %50 = vector.broadcast %49 : f32 to vector<2x1x2x128xf32>
    %51 = arith.addf %48, %50 : vector<2x1x2x128xf32>
    %c0_40 = arith.constant 0 : index
    %c2_41 = arith.constant 2 : index
    %52 = memref.load %arg6[%c0_40, %c2_41] : memref<2x4xf32, #tpu.memory_space<smem>>
    %53 = vector.broadcast %52 : f32 to vector<2x1x2x128xf32>
    %54 = arith.mulf %25, %53 : vector<2x1x2x128xf32>
    %55 = arith.addf %51, %54 : vector<2x1x2x128xf32>
    %c0_42 = arith.constant 0 : index
    %c1_43 = arith.constant 1 : index
    %56 = memref.load %arg6[%c0_42, %c1_43] : memref<2x4xf32, #tpu.memory_space<smem>>
    %57 = vector.broadcast %56 : f32 to vector<2x1x2x128xf32>
    %58 = arith.mulf %24, %57 : vector<2x1x2x128xf32>
    %c0_44 = arith.constant 0 : index
    %c1_45 = arith.constant 1 : index
    %59 = memref.load %arg7[%c0_44, %c1_45] : memref<2x2xf32, #tpu.memory_space<smem>>
    %60 = vector.broadcast %59 : f32 to vector<2x1x2x128xf32>
    %61 = arith.addf %58, %60 : vector<2x1x2x128xf32>
    %c0_46 = arith.constant 0 : index
    %c3_47 = arith.constant 3 : index
    %62 = memref.load %arg6[%c0_46, %c3_47] : memref<2x4xf32, #tpu.memory_space<smem>>
    %63 = vector.broadcast %62 : f32 to vector<2x1x2x128xf32>
    %64 = arith.mulf %25, %63 : vector<2x1x2x128xf32>
    %65 = arith.addf %61, %64 : vector<2x1x2x128xf32>
    %66 = math.tanh %35 : vector<2x1x2x128xf32>
    %cst = arith.constant 2.000000e+00 : f32
    %67 = vector.broadcast %cst : f32 to vector<2x1x2x128xf32>
    %68 = arith.mulf %67, %66 : vector<2x1x2x128xf32>
    %69 = math.exp %68 : vector<2x1x2x128xf32>
    %70 = math.tanh %45 : vector<2x1x2x128xf32>
    %cst_48 = arith.constant 2.000000e+00 : f32
    %71 = vector.broadcast %cst_48 : f32 to vector<2x1x2x128xf32>
    %72 = arith.mulf %71, %70 : vector<2x1x2x128xf32>
    %73 = math.exp %72 : vector<2x1x2x128xf32>
    %74 = arith.mulf %2, %69 : vector<2x1x2x128xf32>
    %75 = arith.addf %74, %55 : vector<2x1x2x128xf32>
    %76 = arith.mulf %3, %73 : vector<2x1x2x128xf32>
    %77 = arith.addf %76, %65 : vector<2x1x2x128xf32>
    %c1_49 = arith.constant 1 : index
    %c0_50 = arith.constant 0 : index
    %78 = memref.load %arg2[%c1_49, %c0_50] : memref<2x4xf32, #tpu.memory_space<smem>>
    %79 = vector.broadcast %78 : f32 to vector<2x1x2x128xf32>
    %80 = arith.mulf %75, %79 : vector<2x1x2x128xf32>
    %c1_51 = arith.constant 1 : index
    %c0_52 = arith.constant 0 : index
    %81 = memref.load %arg3[%c1_51, %c0_52] : memref<2x2xf32, #tpu.memory_space<smem>>
    %82 = vector.broadcast %81 : f32 to vector<2x1x2x128xf32>
    %83 = arith.addf %80, %82 : vector<2x1x2x128xf32>
    %c1_53 = arith.constant 1 : index
    %c2_54 = arith.constant 2 : index
    %84 = memref.load %arg2[%c1_53, %c2_54] : memref<2x4xf32, #tpu.memory_space<smem>>
    %85 = vector.broadcast %84 : f32 to vector<2x1x2x128xf32>
    %86 = arith.mulf %77, %85 : vector<2x1x2x128xf32>
    %87 = arith.addf %83, %86 : vector<2x1x2x128xf32>
    %c1_55 = arith.constant 1 : index
    %c1_56 = arith.constant 1 : index
    %88 = memref.load %arg2[%c1_55, %c1_56] : memref<2x4xf32, #tpu.memory_space<smem>>
    %89 = vector.broadcast %88 : f32 to vector<2x1x2x128xf32>
    %90 = arith.mulf %75, %89 : vector<2x1x2x128xf32>
    %c1_57 = arith.constant 1 : index
    %c1_58 = arith.constant 1 : index
    %91 = memref.load %arg3[%c1_57, %c1_58] : memref<2x2xf32, #tpu.memory_space<smem>>
    %92 = vector.broadcast %91 : f32 to vector<2x1x2x128xf32>
    %93 = arith.addf %90, %92 : vector<2x1x2x128xf32>
    %c1_59 = arith.constant 1 : index
    %c3_60 = arith.constant 3 : index
    %94 = memref.load %arg2[%c1_59, %c3_60] : memref<2x4xf32, #tpu.memory_space<smem>>
    %95 = vector.broadcast %94 : f32 to vector<2x1x2x128xf32>
    %96 = arith.mulf %77, %95 : vector<2x1x2x128xf32>
    %97 = arith.addf %93, %96 : vector<2x1x2x128xf32>
    %98 = arith.addf %24, %87 : vector<2x1x2x128xf32>
    %99 = arith.addf %25, %97 : vector<2x1x2x128xf32>
    %c1_61 = arith.constant 1 : index
    %c0_62 = arith.constant 0 : index
    %100 = memref.load %arg4[%c1_61, %c0_62] : memref<2x4xf32, #tpu.memory_space<smem>>
    %101 = vector.broadcast %100 : f32 to vector<2x1x2x128xf32>
    %102 = arith.mulf %98, %101 : vector<2x1x2x128xf32>
    %c1_63 = arith.constant 1 : index
    %c0_64 = arith.constant 0 : index
    %103 = memref.load %arg5[%c1_63, %c0_64] : memref<2x2xf32, #tpu.memory_space<smem>>
    %104 = vector.broadcast %103 : f32 to vector<2x1x2x128xf32>
    %105 = arith.addf %102, %104 : vector<2x1x2x128xf32>
    %c1_65 = arith.constant 1 : index
    %c2_66 = arith.constant 2 : index
    %106 = memref.load %arg4[%c1_65, %c2_66] : memref<2x4xf32, #tpu.memory_space<smem>>
    %107 = vector.broadcast %106 : f32 to vector<2x1x2x128xf32>
    %108 = arith.mulf %99, %107 : vector<2x1x2x128xf32>
    %109 = arith.addf %105, %108 : vector<2x1x2x128xf32>
    %c1_67 = arith.constant 1 : index
    %c1_68 = arith.constant 1 : index
    %110 = memref.load %arg4[%c1_67, %c1_68] : memref<2x4xf32, #tpu.memory_space<smem>>
    %111 = vector.broadcast %110 : f32 to vector<2x1x2x128xf32>
    %112 = arith.mulf %98, %111 : vector<2x1x2x128xf32>
    %c1_69 = arith.constant 1 : index
    %c1_70 = arith.constant 1 : index
    %113 = memref.load %arg5[%c1_69, %c1_70] : memref<2x2xf32, #tpu.memory_space<smem>>
    %114 = vector.broadcast %113 : f32 to vector<2x1x2x128xf32>
    %115 = arith.addf %112, %114 : vector<2x1x2x128xf32>
    %c1_71 = arith.constant 1 : index
    %c3_72 = arith.constant 3 : index
    %116 = memref.load %arg4[%c1_71, %c3_72] : memref<2x4xf32, #tpu.memory_space<smem>>
    %117 = vector.broadcast %116 : f32 to vector<2x1x2x128xf32>
    %118 = arith.mulf %99, %117 : vector<2x1x2x128xf32>
    %119 = arith.addf %115, %118 : vector<2x1x2x128xf32>
    %c1_73 = arith.constant 1 : index
    %c0_74 = arith.constant 0 : index
    %120 = memref.load %arg6[%c1_73, %c0_74] : memref<2x4xf32, #tpu.memory_space<smem>>
    %121 = vector.broadcast %120 : f32 to vector<2x1x2x128xf32>
    %122 = arith.mulf %98, %121 : vector<2x1x2x128xf32>
    %c1_75 = arith.constant 1 : index
    %c0_76 = arith.constant 0 : index
    %123 = memref.load %arg7[%c1_75, %c0_76] : memref<2x2xf32, #tpu.memory_space<smem>>
    %124 = vector.broadcast %123 : f32 to vector<2x1x2x128xf32>
    %125 = arith.addf %122, %124 : vector<2x1x2x128xf32>
    %c1_77 = arith.constant 1 : index
    %c2_78 = arith.constant 2 : index
    %126 = memref.load %arg6[%c1_77, %c2_78] : memref<2x4xf32, #tpu.memory_space<smem>>
    %127 = vector.broadcast %126 : f32 to vector<2x1x2x128xf32>
    %128 = arith.mulf %99, %127 : vector<2x1x2x128xf32>
    %129 = arith.addf %125, %128 : vector<2x1x2x128xf32>
    %c1_79 = arith.constant 1 : index
    %c1_80 = arith.constant 1 : index
    %130 = memref.load %arg6[%c1_79, %c1_80] : memref<2x4xf32, #tpu.memory_space<smem>>
    %131 = vector.broadcast %130 : f32 to vector<2x1x2x128xf32>
    %132 = arith.mulf %98, %131 : vector<2x1x2x128xf32>
    %c1_81 = arith.constant 1 : index
    %c1_82 = arith.constant 1 : index
    %133 = memref.load %arg7[%c1_81, %c1_82] : memref<2x2xf32, #tpu.memory_space<smem>>
    %134 = vector.broadcast %133 : f32 to vector<2x1x2x128xf32>
    %135 = arith.addf %132, %134 : vector<2x1x2x128xf32>
    %c1_83 = arith.constant 1 : index
    %c3_84 = arith.constant 3 : index
    %136 = memref.load %arg6[%c1_83, %c3_84] : memref<2x4xf32, #tpu.memory_space<smem>>
    %137 = vector.broadcast %136 : f32 to vector<2x1x2x128xf32>
    %138 = arith.mulf %99, %137 : vector<2x1x2x128xf32>
    %139 = arith.addf %135, %138 : vector<2x1x2x128xf32>
    %140 = math.tanh %109 : vector<2x1x2x128xf32>
    %cst_85 = arith.constant 2.000000e+00 : f32
    %141 = vector.broadcast %cst_85 : f32 to vector<2x1x2x128xf32>
    %142 = arith.mulf %141, %140 : vector<2x1x2x128xf32>
    %143 = math.exp %142 : vector<2x1x2x128xf32>
    %144 = math.tanh %119 : vector<2x1x2x128xf32>
    %cst_86 = arith.constant 2.000000e+00 : f32
    %145 = vector.broadcast %cst_86 : f32 to vector<2x1x2x128xf32>
    %146 = arith.mulf %145, %144 : vector<2x1x2x128xf32>
    %147 = math.exp %146 : vector<2x1x2x128xf32>
    %148 = arith.mulf %75, %143 : vector<2x1x2x128xf32>
    %149 = arith.addf %148, %129 : vector<2x1x2x128xf32>
    %150 = arith.mulf %77, %147 : vector<2x1x2x128xf32>
    %151 = arith.addf %150, %139 : vector<2x1x2x128xf32>
    %c0_87 = arith.constant 0 : index
    %c0_88 = arith.constant 0 : index
    %c0_89 = arith.constant 0 : index
    %c0_90 = arith.constant 0 : index
    %152 = vector.load %arg8[%c0_87, %c0_88, %c0_89, %c0_90] : memref<2x4x2x128xf32, #tpu.memory_space<vmem>>, vector<2x1x2x128xf32>
    tpu.vector_store %arg8[%c0_87, %c0_88, %c0_89, %c0_90], %98 {strides = array<i32>} : memref<2x4x2x128xf32, #tpu.memory_space<vmem>>, vector<2x1x2x128xf32>,
    %c0_91 = arith.constant 0 : index
    %c1_92 = arith.constant 1 : index
    %c0_93 = arith.constant 0 : index
    %c0_94 = arith.constant 0 : index
    %153 = vector.load %arg8[%c0_91, %c1_92, %c0_93, %c0_94] : memref<2x4x2x128xf32, #tpu.memory_space<vmem>>, vector<2x1x2x128xf32>
    tpu.vector_store %arg8[%c0_91, %c1_92, %c0_93, %c0_94], %99 {strides = array<i32>} : memref<2x4x2x128xf32, #tpu.memory_space<vmem>>, vector<2x1x2x128xf32>,
    %c0_95 = arith.constant 0 : index
    %c2_96 = arith.constant 2 : index
    %c0_97 = arith.constant 0 : index
    %c0_98 = arith.constant 0 : index
    %154 = vector.load %arg8[%c0_95, %c2_96, %c0_97, %c0_98] : memref<2x4x2x128xf32, #tpu.memory_space<vmem>>, vector<2x1x2x128xf32>
    tpu.vector_store %arg8[%c0_95, %c2_96, %c0_97, %c0_98], %149 {strides = array<i32>} : memref<2x4x2x128xf32, #tpu.memory_space<vmem>>, vector<2x1x2x128xf32>,
    %c0_99 = arith.constant 0 : index
    %c3_100 = arith.constant 3 : index
    %c0_101 = arith.constant 0 : index
    %c0_102 = arith.constant 0 : index
    %155 = vector.load %arg8[%c0_99, %c3_100, %c0_101, %c0_102] : memref<2x4x2x128xf32, #tpu.memory_space<vmem>>, vector<2x1x2x128xf32>
    tpu.vector_store %arg8[%c0_99, %c3_100, %c0_101, %c0_102], %151 {strides = array<i32>} : memref<2x4x2x128xf32, #tpu.memory_space<vmem>>, vector<2x1x2x128xf32>,
    return
  }
  func.func @transform_0(%arg0: i32) -> (i32, i32, i32, i32) {
    %c0_i32 = arith.constant 0 : i32
    %c0_i32_0 = arith.constant 0 : i32
    %c0_i32_1 = arith.constant 0 : i32
    %c0_i32_2 = arith.constant 0 : i32
    return %c0_i32, %c0_i32_0, %arg0, %c0_i32_1 : i32, i32, i32, i32
  }
  func.func @transform_1(%arg0: i32) -> (i32, i32) {
    %c0_i32 = arith.constant 0 : i32
    %c0_i32_0 = arith.constant 0 : i32
    %c0_i32_1 = arith.constant 0 : i32
    return %c0_i32, %c0_i32_0 : i32, i32
  }
  func.func @transform_2(%arg0: i32) -> (i32, i32) {
    %c0_i32 = arith.constant 0 : i32
    %c0_i32_0 = arith.constant 0 : i32
    %c0_i32_1 = arith.constant 0 : i32
    return %c0_i32, %c0_i32_0 : i32, i32
  }
  func.func @transform_3(%arg0: i32) -> (i32, i32) {
    %c0_i32 = arith.constant 0 : i32
    %c0_i32_0 = arith.constant 0 : i32
    %c0_i32_1 = arith.constant 0 : i32
    return %c0_i32, %c0_i32_0 : i32, i32
  }
  func.func @transform_4(%arg0: i32) -> (i32, i32) {
    %c0_i32 = arith.constant 0 : i32
    %c0_i32_0 = arith.constant 0 : i32
    %c0_i32_1 = arith.constant 0 : i32
    return %c0_i32, %c0_i32_0 : i32, i32
  }
  func.func @transform_5(%arg0: i32) -> (i32, i32) {
    %c0_i32 = arith.constant 0 : i32
    %c0_i32_0 = arith.constant 0 : i32
    %c0_i32_1 = arith.constant 0 : i32
    return %c0_i32, %c0_i32_0 : i32, i32
  }
  func.func @transform_6(%arg0: i32) -> (i32, i32) {
    %c0_i32 = arith.constant 0 : i32
    %c0_i32_0 = arith.constant 0 : i32
    %c0_i32_1 = arith.constant 0 : i32
    return %c0_i32, %c0_i32_0 : i32, i32
  }
  func.func @transform_7(%arg0: i32) -> (i32, i32, i32, i32) {
    %c0_i32 = arith.constant 0 : i32
    %c0_i32_0 = arith.constant 0 : i32
    %c0_i32_1 = arith.constant 0 : i32
    %c0_i32_2 = arith.constant 0 : i32
    return %c0_i32, %c0_i32_0, %arg0, %c0_i32_1 : i32, i32, i32, i32
  }
}

</mosaic_0001>

<bundles_post_ra>
// kernel: tpu_custom_call.1
= control target key start
LH: loop header
LB: loop body
LE: loop exit
PB: predicated region body
PF: predicated region fallthrough
CT: control target
= control target key end

     0   :  { %12 = vsyncpa [#allocation3], 0  ;;  %s864_s0 = inlined_call_operand.hbm [shape: f32[2,4,2,128], index: 0, kind: input, shape index: {}]   ;;  %s865_s1 = inlined_call_operand.vmem [shape: f32[2,4], index: 1, kind: input, shape index: {}]   ;;  %s866_s2 = inlined_call_operand.vmem [shape: f32[2,2], index: 2, kind: input, shape index: {}]   ;;  %s867_s3 = inlined_call_operand.vmem [shape: f32[2,4], index: 3, kind: input, shape index: {}]   ;;  %s868_s4 = inlined_call_operand.vmem [shape: f32[2,2], index: 4, kind: input, shape index: {}]   ;;  %s869_s5 = inlined_call_operand.vmem [shape: f32[2,4], index: 5, kind: input, shape index: {}]   ;;  %s870_s6 = inlined_call_operand.vmem [shape: f32[2,2], index: 6, kind: input, shape index: {}]   ;;  %s871_s7 = inlined_call_operand.hbm [shape: f32[2,4,2,128], index: 7, kind: output, shape index: {}]  }
   0x1   :  { %13 = vsyncpa [#allocation5], 0 }
   0x2   :  { %14 = vsyncpa [#allocation8], 0 }
   0x3   :  { %15 = vsyncpa [#allocation11], 0 }
   0x4   :  { %16 = vsyncpa [#allocation14], 0  ;;  %s46_s26 = sshll.u32 %s866_s2, 4  ;;  %s47_s26 = int_to_ptr.vmem [resolvable:$true] %s46_s26 }
   0x5   :  { %17 = vsyncpa [#allocation4], 0  ;;  %s66_s29 = sshll.u32 %s868_s4, 4  ;;  %s451_s30 = scalar_lea.vmem %s47_s26, 32  ;;  %s67_s29 = int_to_ptr.vmem [resolvable:$true] %s66_s29 }
   0x6   :  { %p452_p0 = scmp.ne.s32.totalorder %s47_s26, %s451_s30  ;;  %p456_p1 = scmp.lt.s32.totalorder %s47_s26, %s47_s26 }
   0x7   :  { %p457_p2 = scmp.lt.s32.totalorder %s451_s30, %s451_s30 }
   0x9   :  { %p458_p3 = por %p457_p2, %p456_p1 }
   0xb   :  { %p459_p4 = pnand %p458_p3, %p452_p0 }
   0xd   :  { %462 = shalt.err (!%p459_p4)
}
   0xe   :  { %s579_s8 = smov [#allocation7]   ;;  %s463_s9 = scalar_lea.vmem %s67_s29, 32 }
   0xf   :  { %49 = dma.vmem_to_smem %s47_s26, 32, %s579_s8, [#allocation8]  }
  0x10   :  { %p464_p5 = scmp.ne.s32.totalorder %s67_s29, %s463_s9  ;;  %p468_p6 = scmp.lt.s32.totalorder %s67_s29, %s67_s29 }
  0x11   :  { %p469_p7 = scmp.lt.s32.totalorder %s463_s9, %s463_s9 }
  0x13   :  { %p470_p8 = por %p469_p7, %p468_p6 }
  0x15   :  { %p471_p9 = pnand %p470_p8, %p464_p5 }
  0x17   :  { %474 = shalt.err (!%p471_p9)
}
  0x18   :  { %s580_s2 = smov [#allocation10]   ;;  %s581_s4 = smov [#allocation2]  }
  0x19   :  { %69 = dma.vmem_to_smem %s67_s29, 32, %s580_s2, [#allocation11]  }
  0x1a   :  { %s23_s10 = sshll.u32 %s581_s4, 4  ;;  %s36_s13 = sshll.u32 %s865_s1, 4  ;;  %s24_s10 = int_to_ptr.vmem [resolvable:$true] %s23_s10  ;;  %s37_s13 = int_to_ptr.vmem [resolvable:$true] %s36_s13 }
  0x1b   :  { %s475_s16 = scalar_lea.hbm %s864_s0, 256 }
  0x1c   :  { %p476_p10 = scmp.ne.s32.totalorder %s864_s0, %s475_s16  ;;  %p479_p11 = scmp.lt.u32.totalorder %s475_s16, %s864_s0 }
  0x1e   :  { %p481_p12 = pnand %p479_p11, %p476_p10 }
  0x20   :  { %484 = shalt.err (!%p481_p12)
}
  0x21   :  { %s485_s21 = scalar_lea.vmem %s24_s10, 256  ;;  %p490_p0 = scmp.lt.s32.totalorder %s24_s10, %s24_s10 }
  0x22   :  { %p486_p13 = scmp.ne.s32.totalorder %s24_s10, %s485_s21  ;;  %p491_p1 = scmp.lt.s32.totalorder %s485_s21, %s485_s21 }
  0x24   :  { %p492_p2 = por %p491_p1, %p490_p0 }
  0x26   :  { %p493_p3 = pnand %p492_p2, %p486_p13 }
  0x28   :  { %496 = shalt.err (!%p493_p3)
}
  0x29   :  { %s582_s1 = smov 32   ;;  %s583_s22 = smov 2  }
  0x2a   :  { %29 = dma.hbm_to_vmem [thread:$0]  %s864_s0, 256, %s24_s10, [#allocation3], %s582_s1, %s582_s1, %s583_s22  }
  0x2b   :  { %s497_s25 = scalar_lea.vmem %s37_s13, 32  ;;  %p502_p5 = scmp.lt.s32.totalorder %s37_s13, %s37_s13 }
  0x2c   :  { %p498_p4 = scmp.ne.s32.totalorder %s37_s13, %s497_s25  ;;  %p503_p6 = scmp.lt.s32.totalorder %s497_s25, %s497_s25 }
  0x2e   :  { %p504_p7 = por %p503_p6, %p502_p5 }
  0x30   :  { %p505_p8 = pnand %p504_p7, %p498_p4 }
  0x32   :  { %508 = shalt.err (!%p505_p8)
}
  0x33   :  { %s584_s26 = smov [#allocation6]   ;;  %s56_s29 = sshll.u32 %s867_s3, 4  ;;  %s57_s29 = int_to_ptr.vmem [resolvable:$true] %s56_s29 }
  0x34   :  { %39 = dma.vmem_to_smem %s37_s13, 32, %s584_s26, [#allocation5]  }
  0x35   :  { %s76_s9 = sshll.u32 %s869_s5, 4  ;;  %s509_s0 = scalar_lea.vmem %s57_s29, 32  ;;  %s77_s9 = int_to_ptr.vmem [resolvable:$true] %s76_s9 }
  0x36   :  { %p510_p9 = scmp.ne.s32.totalorder %s57_s29, %s509_s0  ;;  %p514_p10 = scmp.lt.s32.totalorder %s57_s29, %s57_s29 }
  0x37   :  { %p515_p11 = scmp.lt.s32.totalorder %s509_s0, %s509_s0 }
  0x39   :  { %p516_p12 = por %p515_p11, %p514_p10 }
  0x3b   :  { %p517_p13 = pnand %p516_p12, %p510_p9 }
  0x3d   :  { %520 = shalt.err (!%p517_p13)
}
  0x3e   :  { %s585_s2 = smov [#allocation9]   ;;  %s521_s4 = scalar_lea.vmem %s77_s9, 32 }
  0x3f   :  { %59 = dma.vmem_to_smem %s57_s29, 32, %s585_s2, [#allocation8]  }
  0x40   :  { %p522_p0 = scmp.ne.s32.totalorder %s77_s9, %s521_s4  ;;  %p526_p1 = scmp.lt.s32.totalorder %s77_s9, %s77_s9 }
  0x41   :  { %p527_p2 = scmp.lt.s32.totalorder %s521_s4, %s521_s4 }
  0x43   :  { %p528_p3 = por %p527_p2, %p526_p1 }
  0x45   :  { %p529_p4 = pnand %p528_p3, %p522_p0 }
  0x47   :  { %532 = shalt.err (!%p529_p4)
}
  0x48   :  { %s586_s3 = smov [#allocation12]   ;;  %s86_s11 = sshll.u32 %s870_s6, 4  ;;  %s87_s11 = int_to_ptr.vmem [resolvable:$true] %s86_s11 }
  0x49   :  { %79 = dma.vmem_to_smem %s77_s9, 32, %s586_s3, [#allocation11]  }
  0x4a   :  { %s533_s12 = scalar_lea.vmem %s87_s11, 32  ;;  %p538_p6 = scmp.lt.s32.totalorder %s87_s11, %s87_s11 }
  0x4b   :  { %p534_p5 = scmp.ne.s32.totalorder %s87_s11, %s533_s12  ;;  %p539_p7 = scmp.lt.s32.totalorder %s533_s12, %s533_s12 }
  0x4d   :  { %p540_p8 = por %p539_p7, %p538_p6 }
  0x4f   :  { %p541_p9 = pnand %p540_p8, %p534_p5 }
  0x51   :  { %544 = shalt.err (!%p541_p9)
}
  0x52   :  { %s587_s13 = smov [#allocation13]  }
  0x53   :  { %89 = dma.vmem_to_smem %s87_s11, 32, %s587_s13, [#allocation14]  }
  0x54   :  { %567 = dma.done.wait [#allocation3], 256  }
  0x55   :  { %568 = vsyncadd [#allocation3], 4294967040 }
  0x56   :  { %569 = dma.done.wait [#allocation5], 32  }
  0x57   :  { %570 = vsyncadd [#allocation5], 4294967264 }
  0x58   :  { %571 = dma.done.wait [#allocation8], 64  }
  0x59   :  { %572 = vsyncadd [#allocation8], 4294967232 }
  0x5a   :  { %573 = dma.done.wait [#allocation11], 64  }
  0x5b   :  { %574 = vsyncadd [#allocation11], 4294967232 }
  0x5c   :  { %575 = dma.done.wait [#allocation14], 32  }
  0x5d   :  { %576 = vsyncadd [#allocation14], 4294967264 }
  0x5e   :  { %111 = sfence }
  0x5f   :  { %s123_s6 = sld [smem:[#allocation6]]  ;;  %s664_s15 = sld [smem:[#allocation6 + $0x2]]  ;;  %v674_v0 = vld [vmem:[#allocation2 + $0x4] sm:$0x3]  ;;  %v678_v1 = vld [vmem:[#allocation2 + $0xc] sm:$0x3] }
  0x60   :  { %s662_s14 = sld [smem:[#allocation7]]  ;;  %s666_s16 = sld [smem:[#allocation6 + $0x1]]  ;;  %v680_v2 = vld [vmem:[#allocation2 + $0x6] sm:$0x3]  ;;  %v700_v15 = vld [vmem:[#allocation2 + $0xe] sm:$0x3] }
  0x61   :  { %s668_s17 = sld [smem:[#allocation7 + $0x1]]  ;;  %s670_s18 = sld [smem:[#allocation6 + $0x3]]  ;;  %v112_v16 = vld [vmem:[#allocation2] sm:$0x3]  ;;  %v115_v18 = vld [vmem:[#allocation2 + $0x2] sm:$0x3] }
  0x62   :  { %s672_s19 = sld [smem:[#allocation9]]  ;;  %s676_s20 = sld [smem:[#allocation9 + $0x1]]  ;;  %v113_v40 = vld [vmem:[#allocation2 + $0x8] sm:$0x3]  ;;  %v116_v44 = vld [vmem:[#allocation2 + $0xa] sm:$0x3] }
  0x63   :  { %s682_s21 = sld [smem:[#allocation9 + $0x2]]  ;;  %s684_s23 = sld [smem:[#allocation9 + $0x3]] }
  0x64   :  { %s687_s24 = sld [smem:[#allocation10]]  ;;  %s689_s25 = sld [smem:[#allocation10 + $0x1]] }
  0x65   :  { %v124_v3 = vstv %s123_s6  ;;  %v132_v6 = vstv %s664_s15  ;;  %s727_s26 = sld [smem:[#allocation12]]  ;;  %s729_s27 = sld [smem:[#allocation12 + $0x1]] }
  0x66   :  { %v128_v4 = vstv %s662_s14  ;;  %v125_v5 = vmul.f32 %v124_v3, %v674_v0  ;;  %v138_v7 = vstv %s666_s16  ;;  %v126_v8 = vmul.f32 %v124_v3, %v678_v1  ;;  %s731_s28 = sld [smem:[#allocation13]]  ;;  %s733_s29 = sld [smem:[#allocation12 + $0x2]] }
  0x67   :  { %v133_v9 = vmul.f32 %v132_v6, %v680_v2  ;;  %v139_v10 = vmul.f32 %v138_v7, %v674_v0  ;;  %v142_v11 = vstv %s668_s17  ;;  %v146_v12 = vstv %s670_s18  ;;  %s735_s30 = sld [smem:[#allocation13 + $0x1]]  ;;  %s737_s8 = sld [smem:[#allocation12 + $0x3]] }
  0x68   :  { %v129_v13 = vadd.f32 %v128_v4, %v125_v5  ;;  %v147_v14 = vmul.f32 %v146_v12, %v680_v2  ;;  %v156_v20 = vstv %s672_s19  ;;  %v170_v21 = vstv %s676_s20  ;;  %s747_s9 = sld [smem:[#allocation6 + $0x80]]  ;;  %s749_s0 = sld [smem:[#allocation6 + $0x82]] }
  0x69   :  { %v143_v17 = vadd.f32 %v142_v11, %v139_v10  ;;  %v130_v23 = vadd.f32 %v128_v4, %v126_v8  ;;  %v134_v24 = vmul.f32 %v132_v6, %v700_v15  ;;  %v140_v25 = vmul.f32 %v138_v7, %v678_v1  ;;  %s751_s2 = sld [smem:[#allocation6 + $0x81]]  ;;  %s754_s4 = sld [smem:[#allocation6 + $0x83]] }
  0x6a   :  { %v135_v19 = vadd.f32 %v133_v9, %v129_v13  ;;  %v164_v27 = vstv %s682_s21  ;;  %v178_v28 = vstv %s684_s23  ;;  %v160_v30 = vstv %s687_s24  ;;  %s757_s3 = sld [smem:[#allocation7 + $0x80]]  ;;  %s759_s5 = sld [smem:[#allocation7 + $0x81]] }
  0x6b   :  { %v149_v22 = vadd.f32 %v147_v14, %v143_v17  ;;  %v174_v31 = vstv %s689_s25  ;;  %v136_v36 = vadd.f32 %v134_v24, %v130_v23  ;;  %v144_v37 = vadd.f32 %v142_v11, %v140_v25  ;;  %s769_s10 = sld [smem:[#allocation9 + $0x80]]  ;;  %s771_s11 = sld [smem:[#allocation9 + $0x82]] }
  0x6c   :  { %v706_v26 = vadd.f32 %v135_v19, %v112_v16  ;;  %v148_v41 = vmul.f32 %v146_v12, %v700_v15  ;;  %v184_v60 = vstv %s727_s26  ;;  %v198_v62 = vstv %s729_s27  ;;  %s777_s12 = sld [smem:[#allocation10 + $0x80]]  ;;  %s783_s13 = sld [smem:[#allocation9 + $0x81]] }
  0x6d   :  { %v710_v29 = vadd.f32 %v149_v22, %v115_v18  ;;  %v719_v46 = vadd.f32 %v136_v36, %v113_v40  ;;  %v188_v5 = vstv %s731_s28  ;;  %v192_v6 = vstv %s733_s29  ;;  %s785_s6 = sld [smem:[#allocation9 + $0x83]]  ;;  %s791_s14 = sld [smem:[#allocation10 + $0x81]] }
  0x6e   :  { %v157_v32 = vmul.f32 %v156_v20, %v706_v26  ;;  %v171_v33 = vmul.f32 %v170_v21, %v706_v26  ;;  %v150_v45 = vadd.f32 %v148_v41, %v144_v37  ;;  %v185_v3 = vmul.f32 %v184_v60, %v706_v26  ;;  %s823_s15 = sld [smem:[#allocation12 + $0x80]]  ;;  %s825_s16 = sld [smem:[#allocation12 + $0x81]] }
  0x6f   :  { %v165_v34 = vmul.f32 %v164_v27, %v710_v29  ;;  %v179_v35 = vmul.f32 %v178_v28, %v710_v29  ;;  %v158_v48 = vmul.f32 %v156_v20, %v719_v46  ;;  %v172_v49 = vmul.f32 %v170_v21, %v719_v46  ;;  %s827_s17 = sld [smem:[#allocation13 + $0x80]]  ;;  %s829_s18 = sld [smem:[#allocation12 + $0x82]] }
  0x70   :  { %v161_v38 = vadd.f32 %v160_v30, %v157_v32  ;;  %v175_v39 = vadd.f32 %v174_v31, %v171_v33  ;;  %v721_v47 = vadd.f32 %v150_v45, %v116_v44  ;;  %v199_v7 = vmul.f32 %v198_v62, %v706_v26  ;;  %s831_s19 = sld [smem:[#allocation13 + $0x81]]  ;;  %s833_s20 = sld [smem:[#allocation12 + $0x83]] }
  0x71   :  { %v162_v50 = vadd.f32 %v160_v30, %v158_v48  ;;  %v176_v52 = vadd.f32 %v174_v31, %v172_v49  ;;  %v202_v9 = vstv %s735_s30  ;;  %v206_v10 = vstv %s737_s8  ;;  %s588_s21 = smov [#allocation15]  }
  0x72   :  { %v167_v42 = vadd.f32 %v165_v34, %v161_v38  ;;  %v181_v43 = vadd.f32 %v179_v35, %v175_v39  ;;  %v166_v51 = vmul.f32 %v164_v27, %v721_v47  ;;  %v180_v53 = vmul.f32 %v178_v28, %v721_v47  ;;  %s363_s23 = sshll.u32 %s588_s21, 4  ;;  %s364_s23 = int_to_ptr.vmem [resolvable:$true] %s363_s23 }
  0x73   :  { %v189_v13 = vadd.f32 %v188_v5, %v185_v3  ;;  %v193_v14 = vmul.f32 %v192_v6, %v710_v29  ;;  %v203_v17 = vadd.f32 %v202_v9, %v199_v7  ;;  %v207_v18 = vmul.f32 %v206_v10, %v710_v29  ;;  %s545_s24 = scalar_lea.vmem %s364_s23, 256  ;;  %p550_p11 = scmp.lt.s32.totalorder %s364_s23, %s364_s23 }
  0x74   :  { %419 = vtanh.f32 %v167_v42  ;;  %v168_v54 = vadd.f32 %v166_v51, %v162_v50  ;;  %v182_v55 = vadd.f32 %v180_v53, %v176_v52  ;;  %v186_v20 = vmul.f32 %v184_v60, %v719_v46  ;;  %p546_p10 = scmp.ne.s32.totalorder %s364_s23, %s545_s24  ;;  %p551_p12 = scmp.lt.s32.totalorder %s545_s24, %s545_s24 }
  0x75   :  { %421 = vtanh.f32 %v181_v43  ;;  %v195_v21 = vadd.f32 %v193_v14, %v189_v13  ;;  %v200_v22 = vmul.f32 %v198_v62, %v719_v46  ;;  %v209_v24 = vadd.f32 %v207_v18, %v203_v17 }
  0x76   :  { %423 = vtanh.f32 %v168_v54  ;;  %v236_v28 = vstv %s747_s9  ;;  %v244_v30 = vstv %s749_s0  ;;  %v190_v32 = vadd.f32 %v188_v5, %v186_v20  ;;  %p552_p13 = por %p551_p12, %p550_p11 }
  0x77   :  { %425 = vtanh.f32 %v182_v55  ;;  %v194_v33 = vmul.f32 %v192_v6, %v721_v47  ;;  %v250_v34 = vstv %s751_s2  ;;  %v204_v36 = vadd.f32 %v202_v9, %v200_v22 }
  0x78   :  { %v208_v37 = vmul.f32 %v206_v10, %v721_v47  ;;  %v258_v38 = vstv %s754_s4  ;;  %v240_v39 = vstv %s757_s3  ;;  %v272_v62 = vstv %s777_s12  ;;  %p553_p0 = pnand %p552_p13, %p546_p10 }
  0x79   :  { %v196_v43 = vadd.f32 %v194_v33, %v190_v32  ;;  %v290_v3 = vstv %s785_s6 }
  0x7a   :  { %v210_v49 = vadd.f32 %v208_v37, %v204_v36 }
  0x7e   :  { %v420_v56 = vpop.eup %419 }
  0x7f   :  { %v422_v57 = vpop.eup %421  ;;  %v213_v58 = vmul.f32 2.0, %v420_v56 }
  0x80   :  { %v221_v59 = vmul.f32 2.0, %v422_v57  ;;  %v424_v4 = vpop.eup %423  ;;  %v268_v57 = vstv %s769_s10 }
  0x81   :  { %v215_v61 = vmul.f32 1.442695, %v213_v58  ;;  %v426_v8 = vpop.eup %425  ;;  %v214_v11 = vmul.f32 2.0, %v424_v4  ;;  %v276_v58 = vstv %s771_s11 }
  0x82   :  { %v223_v63 = vmul.f32 1.442695, %v221_v59  ;;  %v222_v12 = vmul.f32 2.0, %v426_v8  ;;  %v286_v8 = vstv %s791_s14 }
  0x83   :  { %427 = vpow2.f32 %v215_v61  ;;  %v217_v16 = vmul.f32 1.442695, %v214_v11 }
  0x84   :  { %429 = vpow2.f32 %v223_v63  ;;  %v225_v19 = vmul.f32 1.442695, %v222_v12 }
  0x85   :  { %431 = vpow2.f32 %v217_v16 }
  0x86   :  { %433 = vpow2.f32 %v225_v19 }
  0x8d   :  { %v428_v23 = vpop.eup %427 }
  0x8e   :  { %v430_v25 = vpop.eup %429  ;;  %v227_v27 = vmul.f32 %v428_v23, %v674_v0 }
  0x8f   :  { %v231_v31 = vmul.f32 %v430_v25, %v680_v2  ;;  %v254_v2 = vstv %s759_s5  ;;  %v432_v45 = vpop.eup %431 }
  0x90   :  { %v773_v35 = vadd.f32 %v227_v27, %v195_v21  ;;  %v434_v51 = vpop.eup %433  ;;  %v228_v52 = vmul.f32 %v432_v45, %v678_v1 }
  0x91   :  { %v779_v0 = vadd.f32 %v231_v31, %v209_v24  ;;  %v232_v54 = vmul.f32 %v434_v51, %v700_v15  ;;  %v282_v15 = vstv %s783_s13  ;;  %v296_v31 = vstv %s823_s15 }
  0x92   :  { %v237_v40 = vmul.f32 %v236_v28, %v773_v35  ;;  %v251_v41 = vmul.f32 %v250_v34, %v773_v35  ;;  %v795_v56 = vadd.f32 %v228_v52, %v196_v43  ;;  %v314_v43 = vstv %s831_s19 }
  0x93   :  { %v245_v42 = vmul.f32 %v244_v30, %v779_v0  ;;  %v259_v44 = vmul.f32 %v258_v38, %v779_v0  ;;  %v802_v60 = vadd.f32 %v232_v54, %v210_v49 }
  0x94   :  { %v241_v48 = vadd.f32 %v240_v39, %v237_v40  ;;  %v255_v50 = vadd.f32 %v254_v2, %v251_v41  ;;  %v238_v1 = vmul.f32 %v236_v28, %v795_v56  ;;  %v252_v63 = vmul.f32 %v250_v34, %v795_v56 }
  0x95   :  { %v246_v4 = vmul.f32 %v244_v30, %v802_v60  ;;  %v310_v34 = vstv %s825_s16 }
  0x96   :  { %v247_v53 = vadd.f32 %v245_v42, %v241_v48  ;;  %v261_v55 = vadd.f32 %v259_v44, %v255_v50  ;;  %v242_v6 = vadd.f32 %v240_v39, %v238_v1  ;;  %v256_v7 = vadd.f32 %v254_v2, %v252_v63 }
  0x97   :  { %v300_v39 = vstv %s827_s17  ;;  %v304_v2 = vstv %s829_s18  ;;  %v318_v44 = vstv %s833_s20 }
  0x98   :  { %v800_v59 = vadd.f32 %v247_v53, %v706_v26  ;;  %v805_v61 = vadd.f32 %v261_v55, %v710_v29  ;;  %v260_v26 = vmul.f32 %v258_v38, %v802_v60  ;;  %v248_v12 = vadd.f32 %v246_v4, %v242_v6 }
  0x9a   :  { %347 = vst [vmem:[#allocation15] sm:$0x3] %v800_v59  ;;  %350 = vst [vmem:[#allocation15 + $0x2] sm:$0x3] %v805_v61  ;;  %v269_v5 = vmul.f32 %v268_v57, %v800_v59  ;;  %v277_v29 = vmul.f32 %v276_v58, %v805_v61  ;;  %v283_v10 = vmul.f32 %v282_v15, %v800_v59 }
  0x9b   :  { %v291_v11 = vmul.f32 %v290_v3, %v805_v61  ;;  %v262_v13 = vadd.f32 %v260_v26, %v256_v7  ;;  %v264_v17 = vadd.f32 %v248_v12, %v719_v46  ;;  %v297_v37 = vmul.f32 %v296_v31, %v800_v59 }
  0x9c   :  { %v273_v9 = vadd.f32 %v272_v62, %v269_v5  ;;  %v287_v16 = vadd.f32 %v286_v8, %v283_v10  ;;  %v311_v42 = vmul.f32 %v310_v34, %v800_v59  ;;  %v305_v49 = vmul.f32 %v304_v2, %v805_v61 }
  0x9d   :  { %v266_v18 = vadd.f32 %v262_v13, %v721_v47  ;;  %348 = vst [vmem:[#allocation15 + $0x8] sm:$0x3] %v264_v17  ;;  %v270_v20 = vmul.f32 %v268_v57, %v264_v17  ;;  %v284_v22 = vmul.f32 %v282_v15, %v264_v17  ;;  %v301_v48 = vadd.f32 %v300_v39, %v297_v37 }
  0x9e   :  { %v279_v14 = vadd.f32 %v277_v29, %v273_v9  ;;  %v293_v19 = vadd.f32 %v291_v11, %v287_v16  ;;  %v315_v52 = vadd.f32 %v314_v43, %v311_v42  ;;  %v319_v53 = vmul.f32 %v318_v44, %v805_v61 }
  0x9f   :  { %351 = vst [vmem:[#allocation15 + $0xa] sm:$0x3] %v266_v18  ;;  %v278_v21 = vmul.f32 %v276_v58, %v266_v18  ;;  %v292_v23 = vmul.f32 %v290_v3, %v266_v18  ;;  %v274_v24 = vadd.f32 %v272_v62, %v270_v20  ;;  %v288_v25 = vadd.f32 %v286_v8, %v284_v22 }
  0xa0   :  { %435 = vtanh.f32 %v279_v14  ;;  %v298_v54 = vmul.f32 %v296_v31, %v264_v17  ;;  %v307_v55 = vadd.f32 %v305_v49, %v301_v48  ;;  %v312_v57 = vmul.f32 %v310_v34, %v264_v17 }
  0xa1   :  { %437 = vtanh.f32 %v293_v19  ;;  %v280_v27 = vadd.f32 %v278_v21, %v274_v24  ;;  %v294_v28 = vadd.f32 %v292_v23, %v288_v25  ;;  %v321_v59 = vadd.f32 %v319_v53, %v315_v52 }
  0xa2   :  { %v302_v63 = vadd.f32 %v300_v39, %v298_v54  ;;  %v306_v15 = vmul.f32 %v304_v2, %v266_v18  ;;  %v316_v26 = vadd.f32 %v314_v43, %v312_v57  ;;  %v320_v5 = vmul.f32 %v318_v44, %v266_v18 }
  0xa3   :  { %439 = vtanh.f32 %v280_v27 }
  0xa4   :  { %441 = vtanh.f32 %v294_v28  ;;  %v308_v6 = vadd.f32 %v306_v15, %v302_v63  ;;  %v322_v7 = vadd.f32 %v320_v5, %v316_v26 }
  0xaa   :  { %v436_v46 = vpop.eup %435 }
  0xab   :  { %v325_v47 = vmul.f32 2.0, %v436_v46  ;;  %v438_v30 = vpop.eup %437 }
  0xac   :  { %v333_v33 = vmul.f32 2.0, %v438_v30 }
  0xad   :  { %v327_v32 = vmul.f32 1.442695, %v325_v47  ;;  %v440_v38 = vpop.eup %439 }
  0xae   :  { %v335_v36 = vmul.f32 1.442695, %v333_v33  ;;  %v442_v40 = vpop.eup %441  ;;  %v326_v41 = vmul.f32 2.0, %v440_v38 }
  0xaf   :  { %443 = vpow2.f32 %v327_v32  ;;  %v334_v45 = vmul.f32 2.0, %v442_v40 }
  0xb0   :  { %445 = vpow2.f32 %v335_v36  ;;  %v329_v50 = vmul.f32 1.442695, %v326_v41 }
  0xb1   :  { %v337_v51 = vmul.f32 1.442695, %v334_v45 }
  0xb2   :  { %447 = vpow2.f32 %v329_v50 }
  0xb3   :  { %449 = vpow2.f32 %v337_v51 }
  0xb9   :  { %v444_v58 = vpop.eup %443 }
  0xba   :  { %v339_v62 = vmul.f32 %v444_v58, %v773_v35  ;;  %v446_v1 = vpop.eup %445 }
  0xbb   :  { %v343_v4 = vmul.f32 %v446_v1, %v779_v0 }
  0xbc   :  { %v341_v3 = vadd.f32 %v339_v62, %v307_v55  ;;  %v448_v61 = vpop.eup %447 }
  0xbd   :  { %v345_v29 = vadd.f32 %v343_v4, %v321_v59  ;;  %v450_v8 = vpop.eup %449  ;;  %v340_v9 = vmul.f32 %v448_v61, %v795_v56 }
  0xbe   :  { %353 = vst [vmem:[#allocation15 + $0x4] sm:$0x3] %v341_v3  ;;  %v344_v35 = vmul.f32 %v450_v8, %v802_v60 }
  0xbf   :  { %356 = vst [vmem:[#allocation15 + $0x6] sm:$0x3] %v345_v29  ;;  %v342_v10 = vadd.f32 %v340_v9, %v308_v6 }
  0xc0   :  { %v346_v11 = vadd.f32 %v344_v35, %v322_v7 }
  0xc1   :  { %354 = vst [vmem:[#allocation15 + $0xc] sm:$0x3] %v342_v10 }
  0xc2   :  { %357 = vst [vmem:[#allocation15 + $0xe] sm:$0x3] %v346_v11 }
  0xc3   :  { %556 = shalt.err (!%p553_p0)
}
  0xc4   :  { %s557_s27 = scalar_lea.hbm %s871_s7, 256 }
  0xc5   :  { %p558_p1 = scmp.ne.s32.totalorder %s871_s7, %s557_s27  ;;  %p561_p2 = scmp.lt.u32.totalorder %s557_s27, %s871_s7 }
  0xc7   :  { %p563_p3 = pnand %p561_p2, %p558_p1 }
  0xc9   :  { %566 = shalt.err (!%p563_p3)
}
  0xca   :  { %369 = dma.vmem_to_hbm [thread:$0]  %s364_s23, 256, %s871_s7, [#allocation4], %s582_s1, %s582_s1, %s583_s22  }
  0xcb   :  { %577 = dma.done.wait [#allocation4], 256  }
  0xcc   :  { %578 = vsyncadd [#allocation4], 4294967040 }
  0xcd   :  { %373 = vsyncpa [#allocation3], 1 }
  0xce   :  { %374 = vsyncpa [#allocation4], 1 }
  0xcf   :  { %375 = vsyncpa [#allocation5], 1 }
  0xd0   :  { %376 = vsyncpa [#allocation8], 1 }
  0xd1   :  { %377 = vsyncpa [#allocation11], 1 }
  0xd2   :  { %378 = vsyncpa [#allocation14], 1 }

</bundles_post_ra>
